<compile_context>
chip_gen: v7x
topology: tpu7x:2x2x1
jax: 0.10.0
libtpu: 0.0.40
codegen_flags: <defaults>
</compile_context>

<pallas_src>
import jax
import jax.numpy as jnp
from jax.experimental import pallas as pl
from jax.experimental.pallas import tpu as pltpu


def _feature_kernel(x_ref, w_ref, b_ref, o_ref):
    # x_ref: (TILE_B, F) VMEM   w_ref: (1, F) VMEM
    # b_ref: (1,)       SMEM   o_ref: (1, TILE_B) VMEM  (lane-dense)
    # Contract the feature axis of both operands ("NT" matmul, same pattern
    # as q @ k.T in flash attention) -> (1, TILE_B) row vector in lanes.
    y = jax.lax.dot_general(
        w_ref[...], x_ref[...],
        dimension_numbers=(((1,), (1,)), ((), ())),
        preferred_element_type=jnp.float32,
    )
    y = y + b_ref[0]                      # scalar bias from SMEM
    o_ref[...] = jnp.tanh(y).astype(o_ref.dtype)


def _round_up(n, m):
    return ((n + m - 1) // m) * m


def feature_model_forward(x, w, b, *, target_tile_bytes=4 << 20):
    """y = tanh(x @ w.T + b); x: (B, F), w: (1, F), b: (1,) -> (B, 1)."""
    B, F = x.shape
    assert w.shape == (1, F)
    itemsize = jnp.dtype(x.dtype).itemsize

    # Large batch tile (multiple of 128 for lane-dense output stores), but
    # capped at ~4 MiB per buffer so 2x-buffered x + weights + output stay
    # well inside the scoped-VMEM default on v5e/v6e/v7x.
    tile_b = max(128, (target_tile_bytes // max(1, F * itemsize)) // 128 * 128)
    tile_b = min(tile_b, _round_up(B, 128))
    # TODO(synk): for very large F (tens of thousands) add a second grid axis
    # over F with an f32 scratch accumulator instead of growing the tile.

    b_pad = _round_up(B, tile_b)
    if b_pad != B:
        x = jnp.pad(x, ((0, b_pad - B), (0, 0)))
    grid = (b_pad // tile_b,)

    out = pl.pallas_call(
        _feature_kernel,
        out_shape=jax.ShapeDtypeStruct((1, b_pad), x.dtype),
        grid_spec=pltpu.PrefetchScalarGridSpec(
            num_scalar_prefetch=0,
            grid=grid,
            in_specs=[
                # x: batch-tiled, features whole (lane axis).
                pl.BlockSpec((tile_b, F), lambda i: (i, 0)),
                # w: resident lane-dense (1, F) block for every tile.
                pl.BlockSpec((1, F), lambda i: (0, 0)),
                # bias: scalar in SMEM.
                pl.BlockSpec(memory_space=pltpu.MemorySpace.SMEM),
            ],
            out_specs=pl.BlockSpec((1, tile_b), lambda i: (0, i)),
        ),
        compiler_params=pltpu.CompilerParams(
            dimension_semantics=("parallel",),
        ),
    )(x, w, b)

    return out[0, :B].reshape(B, 1)


def init_feature_model_params(key, feat_size, dtype=jnp.float32):
    """nn.Linear default init: U(-1/sqrt(F), 1/sqrt(F)); PyTorch (1, F) weight layout."""
    kw, kb = jax.random.split(key)
    bound = 1.0 / float(feat_size) ** 0.5
    w = jax.random.uniform(kw, (1, feat_size), dtype, -bound, bound)
    b = jax.random.uniform(kb, (1,), dtype, -bound, bound)
    return w, b


if __name__ == "__main__":
    key = jax.random.PRNGKey(0)
    kx, kp = jax.random.split(key)

    feat_size = 32
    batch = 8
    x = jax.random.normal(kx, (batch, feat_size), jnp.float32)
    w, b = init_feature_model_params(kp, feat_size)

    y = feature_model_forward(x, w, b)
    jax.block_until_ready(y)

    # Reference: nn.Sequential(Linear(featSize, 1), Tanh()).
    y_ref = jnp.tanh(x @ w.T + b)
    assert y.shape == (batch, 1)
    assert jnp.allclose(y, y_ref, atol=1e-5, rtol=1e-5)

    print("KERNEL_OK")
</pallas_src>

<mosaic_0001>
module attributes {stable_mosaic.version = 11 : i64} {
  func.func @_feature_kernel(%arg0: i32, %arg1: memref<128x32xf32, #tpu.memory_space<vmem>>, %arg2: memref<1x32xf32, #tpu.memory_space<vmem>>, %arg3: memref<1xf32, #tpu.memory_space<smem>>, %arg4: memref<1x128xf32, #tpu.memory_space<vmem>>) attributes {dimension_semantics = [#tpu.dimension_semantics<parallel>], iteration_bounds = array<i64: 1>, scalar_prefetch = 0 : i64, scratch_operands = 0 : i64, tpu.core_type = #tpu.core_type<tc>, window_params = [{transform_indices = @transform_0, window_bounds = array<i64: 128, 32>}, {pipeline_mode = #tpu.pipeline_mode<synchronous>, transform_indices = @transform_1, window_bounds = array<i64: 1, 32>}, {transform_indices = @transform_2, window_bounds = array<i64: 1>}, {transform_indices = @transform_3, window_bounds = array<i64: 1, 128>}]} {
    %c0 = arith.constant 0 : index
    %c0_0 = arith.constant 0 : index
    %0 = vector.load %arg2[%c0, %c0_0] : memref<1x32xf32, #tpu.memory_space<vmem>>, vector<1x32xf32>
    %c0_1 = arith.constant 0 : index
    %c0_2 = arith.constant 0 : index
    %1 = vector.load %arg1[%c0_1, %c0_2] : memref<128x32xf32, #tpu.memory_space<vmem>>, vector<128x32xf32>
    %cst = arith.constant dense<0.000000e+00> : vector<1x128xf32>
    %2 = tpu.matmul %0, %1, %cst {dimension_numbers = #tpu.dot_dimension_numbers<[1], [1], [0], [0], [0, 0, 1, 0], [], []>} : vector<1x32xf32>, vector<128x32xf32>, vector<1x128xf32> -> vector<1x128xf32>
    %c0_3 = arith.constant 0 : index
    %3 = memref.load %arg3[%c0_3] : memref<1xf32, #tpu.memory_space<smem>>
    %4 = vector.broadcast %3 : f32 to vector<1x128xf32>
    %5 = arith.addf %2, %4 : vector<1x128xf32>
    %6 = math.tanh %5 : vector<1x128xf32>
    %c0_4 = arith.constant 0 : index
    %c0_5 = arith.constant 0 : index
    %7 = vector.load %arg4[%c0_4, %c0_5] : memref<1x128xf32, #tpu.memory_space<vmem>>, vector<1x128xf32>
    tpu.vector_store %arg4[%c0_4, %c0_5], %6 {strides = array<i32>} : memref<1x128xf32, #tpu.memory_space<vmem>>, vector<1x128xf32>,
    return
  }
  func.func @transform_0(%arg0: i32) -> (i32, i32) {
    %c0_i32 = arith.constant 0 : i32
    %c0_i32_0 = arith.constant 0 : i32
    return %arg0, %c0_i32 : i32, i32
  }
  func.func @transform_1(%arg0: i32) -> (i32, i32) {
    %c0_i32 = arith.constant 0 : i32
    %c0_i32_0 = arith.constant 0 : i32
    %c0_i32_1 = arith.constant 0 : i32
    return %c0_i32, %c0_i32_0 : i32, i32
  }
  func.func @transform_2(%arg0: i32) -> i32 {
    %c0_i32 = arith.constant 0 : i32
    %c0_i32_0 = arith.constant 0 : i32
    return %c0_i32 : i32
  }
  func.func @transform_3(%arg0: i32) -> (i32, i32) {
    %c0_i32 = arith.constant 0 : i32
    %c0_i32_0 = arith.constant 0 : i32
    return %c0_i32, %arg0 : i32, i32
  }
}

</mosaic_0001>

<bundles_post_ra>
// kernel: tpu_custom_call.1
= control target key start
LH: loop header
LB: loop body
LE: loop exit
PB: predicated region body
PF: predicated region fallthrough
CT: control target
= control target key end

     0   :  { %vm35_vm0 = vcmask 261120   ;;  %v304_v2 = vmov 0.0|0.0   ;;  %vm305_vm2 = vmmov 0   ;;  %v306_v5 = vmov 0.0   ;;  %s417_s0 = inlined_call_operand.vmem [shape: f32[128,32], index: 0, kind: input, shape index: {}]   ;;  %s418_s1 = inlined_call_operand.vmem [shape: f32[1,32], index: 1, kind: input, shape index: {}]   ;;  %s419_s2 = inlined_call_operand.<no memory space> [shape: f32[1], index: 2, kind: input, shape index: {}]   ;;  %s420_s3 = inlined_call_operand.hbm [shape: f32[1,128], index: 3, kind: output, shape index: {}]  }
   0x1   :  { %v17_v0 = vld [vmem:[%s417_s0] sm:$0xff]  ;;  %v18_v1 = vld [vmem:[%s417_s0 + $0x8] sm:$0xff]  ;;  %242 = vmatprep.subr.bf16.mxu0 %v304_v2  ;;  %vm336_vm1 = vmpackc.low %vm35_vm0, %vm35_vm0  ;;  %239 = vmatprep.mubr.msk.f32.mxu0 %vm305_vm2, %v306_v5 }
   0x2   :  { %v243_v3 = vpack.c.bf16 %v18_v1, %v17_v0  ;;  %v19_v6 = vld [vmem:[%s417_s0 + $0x10] sm:$0xff]  ;;  %v20_v7 = vld [vmem:[%s417_s0 + $0x18] sm:$0xff] }
   0x4   :  { %245 = vmatpush3.bf16.xpose.msk.msra.mxu0 %vm336_vm1, %v243_v3 }
   0x5   :  { %246 = vmatprep.subr.bf16.mxu0 %v304_v2 }
   0x6   :  { %9 = vsyncpa [#allocation4], 0  ;;  %v247_v8 = vpack.c.bf16 %v20_v7, %v19_v6  ;;  %v21_v9 = vld [vmem:[%s417_s0 + $0x20] sm:$0xff]  ;;  %v22_v10 = vld [vmem:[%s417_s0 + $0x28] sm:$0xff]  ;;  %v34_v28 = vstv %s419_s2  ;;  %s307_s21 = smov [#allocation3]  }
   0x7   :  { %v251_v11 = vpack.c.bf16 %v22_v10, %v21_v9  ;;  %v23_v12 = vld [vmem:[%s417_s0 + $0x30] sm:$0xff]  ;;  %v24_v13 = vld [vmem:[%s417_s0 + $0x38] sm:$0xff]  ;;  %v25_v15 = vld [vmem:[%s417_s0 + $0x40] sm:$0xff] }
   0x8   :  { %v255_v14 = vpack.c.bf16 %v24_v13, %v23_v12  ;;  %v26_v16 = vld [vmem:[%s417_s0 + $0x48] sm:$0xff]  ;;  %v27_v18 = vld [vmem:[%s417_s0 + $0x50] sm:$0xff]  ;;  %v28_v19 = vld [vmem:[%s417_s0 + $0x58] sm:$0xff] }
   0x9   :  { %v259_v17 = vpack.c.bf16 %v26_v16, %v25_v15  ;;  %v263_v20 = vpack.c.bf16 %v28_v19, %v27_v18  ;;  %v29_v21 = vld [vmem:[%s417_s0 + $0x60] sm:$0xff]  ;;  %v30_v22 = vld [vmem:[%s417_s0 + $0x68] sm:$0xff]  ;;  %v31_v24 = vld [vmem:[%s417_s0 + $0x70] sm:$0xff] }
   0xa   :  { %v267_v23 = vpack.c.bf16 %v30_v22, %v29_v21  ;;  %v32_v25 = vld [vmem:[%s417_s0 + $0x78] sm:$0xff]  ;;  %v16_v27 = vld [vmem:[%s418_s1] sm:$0x1]  ;;  %s165_s0 = sshll.u32 %s307_s21, 4  ;;  %s166_s0 = int_to_ptr.vmem [resolvable:$true] %s165_s0 }
   0xb   :  { %v271_v26 = vpack.c.bf16 %v32_v25, %v31_v24  ;;  %s280_s22 = scalar_lea.vmem %s166_s0, 16  ;;  %s284_s23 = scalar_lea.vmem %s166_s0, 32 }
   0xc   :  { %249 = vmatpush3.bf16.xpose.msk.msra.mxu0 %vm336_vm1, %v247_v8  ;;  %p281_p0 = scmp.ne.s32.totalorder %s166_s0, %s280_s22  ;;  %p285_p1 = scmp.lt.s32.totalorder %s166_s0, %s166_s0 }
   0xd   :  { %250 = vmatprep.subr.bf16.mxu0 %v304_v2  ;;  %p286_p2 = scmp.lt.s32.totalorder %s284_s23, %s280_s22 }
   0xf   :  { %p287_p3 = por %p286_p2, %p285_p1 }
  0x11   :  { %p288_p4 = pnand %p287_p3, %p281_p0 }
  0x14   :  { %253 = vmatpush3.bf16.xpose.msk.msra.mxu0 %vm336_vm1, %v251_v11 }
  0x15   :  { %254 = vmatprep.subr.bf16.mxu0 %v304_v2 }
  0x1c   :  { %257 = vmatpush3.bf16.xpose.msk.msra.mxu0 %vm336_vm1, %v255_v14 }
  0x1d   :  { %258 = vmatprep.subr.bf16.mxu0 %v304_v2 }
  0x24   :  { %261 = vmatpush3.bf16.xpose.msk.msra.mxu0 %vm336_vm1, %v259_v17 }
  0x25   :  { %262 = vmatprep.subr.bf16.mxu0 %v304_v2 }
  0x2c   :  { %265 = vmatpush3.bf16.xpose.msk.msra.mxu0 %vm336_vm1, %v263_v20 }
  0x2d   :  { %266 = vmatprep.subr.bf16.mxu0 %v304_v2 }
  0x34   :  { %269 = vmatpush3.bf16.xpose.msk.msra.mxu0 %vm336_vm1, %v267_v23 }
  0x35   :  { %270 = vmatprep.subr.bf16.mxu0 %v304_v2 }
  0x3c   :  { %273 = vmatpush3.bf16.xpose.msk.msra.mxu0 %vm336_vm1, %v271_v26 }
  0x43   :  { %240 = vmatmul.mubr.msk.f32.vlgmr.msra.gmra.mrb[0].mxu0 %vm35_vm0, %v16_v27 }
 0x116   :  { %v153_v29 = vpop.f32.mrb[0].mxu0 }
 0x117   :  { %v154_v30 = vadd.f32 %v153_v29, %v34_v28  ;;  %v241_v31 = vpop.f32.mrb[1].mxu0 }
 0x119   :  { %278 = vtanh.f32 %v154_v30 }
 0x123   :  { %v279_v32 = vpop.eup %278 }
 0x124   :  { %158 = vst [vmem:[#allocation3] sm:$0x1] %v279_v32 }
 0x125   :  { %291 = shalt.err (!%p288_p4)
}
 0x126   :  { %s292_s2 = scalar_lea.hbm %s420_s3, 16 }
 0x127   :  { %p293_p5 = scmp.ne.s32.totalorder %s420_s3, %s292_s2  ;;  %p296_p6 = scmp.lt.u32.totalorder %s292_s2, %s420_s3 }
 0x129   :  { %p298_p7 = pnand %p296_p6, %p293_p5 }
 0x12b   :  { %301 = shalt.err (!%p298_p7)
}
 0x12c   :  { %168 = dma.vmem_to_hbm [thread:$0]  %s166_s0, 16, %s420_s3, [#allocation4]  }
 0x12d   :  { %302 = dma.done.wait [#allocation4], 16  }
 0x12e   :  { %303 = vsyncadd [#allocation4], 4294967280 }
 0x12f   :  { %172 = vsyncpa [#allocation4], 1 }

</bundles_post_ra>
